<compile_context>
chip_gen: v7x
topology: tpu7x:2x2x1
jax: 0.10.0
libtpu: 0.0.40
codegen_flags: <defaults>
</compile_context>

<pallas_src>
import functools
import math

import numpy as np
import jax
import jax.numpy as jnp
from jax.experimental import pallas as pl
from jax.experimental.pallas import tpu as pltpu

EPS = 1e-10
FP, FN, SMOOTH = 0.8, 0.2, 0.0      # MemoryEfficientTverskyLoss(fp=0.8, fn=0.2, smooth=0)
TVERSKY_WEIGHT = 0.5                # criterion_dict['tversky']['weight']
RCE_WEIGHT = 0.5                    # blob_criterion_dict['rce']['weight']
RCE_ALPHA = 1.0                     # TODO(synk): RegionLoss base class is not shown in the
                                    # source; assumed CompoundLoss defaults (multiclass, alpha=1).
MAX_BLOBS = 8                       # static bound on blobs per element (padded id table)
HALVES = 2                          # 2-way spatial split -> second "parallel" grid axis (v7x)


# -----------------------------------------------------------------------------
# Generation-aware sizing helpers
# -----------------------------------------------------------------------------
def _vmem_capacity_bytes():
    try:
        return int(pltpu.get_tpu_info().vmem_capacity_bytes)
    except Exception:
        return 64 * 1024 * 1024      # conservative default (v7x-sized VMEM)


def _spatial_tile(s, c, b, vmem_cap):
    """Largest lane tile (multiple of 128) that fits the VMEM working set."""
    s_half = -(-s // HALVES)
    # ~32K lanes on 64-MiB-VMEM chips (v7x), ~64K on 128-MiB chips (v5e/v6e)
    cap = 32768 if vmem_cap <= 80 * 1024 * 1024 else 65536
    # rough per-lane f32 bytes: double-buffered inputs + elementwise temporaries
    bytes_per_lane = 4 * (2 * (c + 2) + 5 * c + 2 * (b + c + 2) + 10)
    fit = (vmem_cap // 2) // bytes_per_lane
    cap = min(cap, max(128, (fit // 128) * 128))
    if s_half <= cap:
        return max(128, ((s_half + 127) // 128) * 128)
    return cap


# -----------------------------------------------------------------------------
# Fused statistics kernel: one batch element x one spatial half x one lane tile.
# Accumulates two small MXU products directly into the resident output blocks.
# -----------------------------------------------------------------------------
def _blob_stats_kernel(x_ref, y_ref, ml_ref, lab_ref, gp_ref, ge_ref):
    C, TS = x_ref.shape[1], x_ref.shape[2]
    s_idx = pl.program_id(2)

    @pl.when(s_idx == 0)
    def _init():
        gp_ref[...] = jnp.zeros(gp_ref.shape, gp_ref.dtype)
        ge_ref[...] = jnp.zeros(ge_ref.shape, ge_ref.dtype)

    x = x_ref[0]                                          # (C, TS) logits (pad = 0)
    y = y_ref[0]                                          # (1, TS) class labels (pad = -1)
    ml = ml_ref[0]                                        # (1, TS) blob labels  (pad = -1)
    lab = lab_ref[0]                                      # (B, 1)  blob-id table (0 = empty)

    # shared softmax / log-sum-exp over channels (computed once per pixel)
    m = jnp.max(x, axis=0, keepdims=True)                 # (1, TS)
    e = jnp.exp(x - m)
    se = jnp.sum(e, axis=0, keepdims=True)                # (1, TS)
    p = e * pl.reciprocal(se, approx=False)               # (C, TS) softmax (exact recip)
    lse = m + jnp.log(se)                                 # (1, TS) log-sum-exp

    # mask columns: [background, blob_0..B-1, onehot_0..C-1, ones]
    # (pad pixels have y = ml = -1, so they only touch the trailing "ones" column)
    cls = jax.lax.broadcasted_iota(jnp.int32, (C, 1), 0)
    onehot = (y == cls).astype(jnp.float32)               # (C, TS)
    bg = (ml == 0).astype(jnp.float32)                    # (1, TS)
    blob = (ml == lab).astype(jnp.float32)                # (B, TS)
    ones = jnp.ones((1, TS), jnp.float32)
    mk = jnp.concatenate([bg, blob, onehot, ones], axis=0)          # (B+C+2, TS)

    # two NT matmuls (contract the lane axis of BOTH operands -> no transpose)
    nt = (((1,), (1,)), ((), ()))
    gp_ref[0, 0] += jax.lax.dot_general(p, mk, nt,
                                        preferred_element_type=jnp.float32)
    extra = jnp.concatenate([lse, x[0:1, :], x[1:2, :], ones], axis=0)  # (4, TS)
    ge_ref[0, 0] += jax.lax.dot_general(extra, mk, nt,
                                        preferred_element_type=jnp.float32)


# -----------------------------------------------------------------------------
# Wrapper: reshape/pad, one pallas_call, tiny closed-form finalize in JAX.
# -----------------------------------------------------------------------------
def btversky_rce_loss(x, y, multi_label, blob_labels, alpha=2.0, beta=1.0):
    N, C, H, W = x.shape
    assert C >= 2, "blob RCE target is binary {0,1}; needs >= 2 channels"
    S = H * W
    B = blob_labels.shape[1]

    vmem_cap = _vmem_capacity_bytes()
    ts = _spatial_tile(S, C, B, vmem_cap)
    s_pad = -(-S // (HALVES * ts)) * (HALVES * ts)
    num_s = s_pad // (HALVES * ts)
    pad = s_pad - S

    x_f = x.reshape(N, C, S).astype(jnp.float32)
    y_f = y.reshape(N, 1, S).astype(jnp.int32)
    ml_f = multi_label.reshape(N, 1, S).astype(jnp.int32)
    lab = blob_labels.astype(jnp.int32).reshape(N, B, 1)
    if pad:
        x_f = jnp.pad(x_f, ((0, 0), (0, 0), (0, pad)))                       # logits 0
        y_f = jnp.pad(y_f, ((0, 0), (0, 0), (0, pad)), constant_values=-1)   # no class
        ml_f = jnp.pad(ml_f, ((0, 0), (0, 0), (0, pad)), constant_values=-1)

    ncols = B + C + 2
    vmem_limit = max(32 * 1024 * 1024,
                     min(int(vmem_cap * 3 // 4), 100 * 1024 * 1024))

    gp, ge = pl.pallas_call(
        _blob_stats_kernel,
        grid=(N, HALVES, num_s),
        in_specs=[
            pl.BlockSpec((1, C, ts), lambda n, h, s: (n, 0, h * num_s + s)),
            pl.BlockSpec((1, 1, ts), lambda n, h, s: (n, 0, h * num_s + s)),
            pl.BlockSpec((1, 1, ts), lambda n, h, s: (n, 0, h * num_s + s)),
            pl.BlockSpec((1, B, 1), lambda n, h, s: (n, 0, 0)),
        ],
        out_specs=(
            pl.BlockSpec((1, 1, C, ncols), lambda n, h, s: (n, h, 0, 0)),
            pl.BlockSpec((1, 1, 4, ncols), lambda n, h, s: (n, h, 0, 0)),
        ),
        out_shape=(
            jax.ShapeDtypeStruct((N, HALVES, C, ncols), jnp.float32),  # softmax sums
            jax.ShapeDtypeStruct((N, HALVES, 4, ncols), jnp.float32),  # lse/x0/x1/count sums
        ),
        compiler_params=pltpu.CompilerParams(
            dimension_semantics=("parallel", "parallel", "arbitrary"),
            vmem_limit_bytes=vmem_limit,
        ),
    )(x_f, y_f, ml_f, lab)

    # ---- finalize (tiny arrays, done in plain JAX) ---------------------------
    # column layout of the accumulators
    BG, BLOB0, OH0, ONES = 0, 1, 1 + B, 1 + B + C
    gp_s = gp.sum(axis=1)                                  # (N, C, ncols)
    ge_s = ge.sum(axis=1)                                  # (N, 4, ncols)
    s_f = float(S)

    # main (Tversky) loss: 0.5 * mean(1 - tversky_index)
    oh_block = gp_s[:, :, OH0:OH0 + C]                     # (N, C, C): sum_{y==c'} p_c
    inter = jnp.diagonal(oh_block, axis1=1, axis2=2)       # (N, C)
    sgt = ge_s[:, 3, OH0:OH0 + C]                          # (N, C) exact per-class counts
    spred = gp_s[:, :, ONES] - float(pad) / C              # (N, C) pad pixels predict 1/C
    denom = inter + FP * spred + FN * sgt + SMOOTH
    tv = 1.0 - inter / denom
    main_loss = TVERSKY_WEIGHT * jnp.mean(tv)

    # blob (RCE) statistics.  keep-mask = background ∪ blob; dropped pixels have
    # all-zero masked logits => softmax = 1/C, lse = log(C), picked = 0, so only
    # the bg / blob column sums plus closed-form corrections are needed.
    bg_p = gp_s[:, :, BG]                                  # (N, C)   sum_bg softmax
    blob_p = gp_s[:, :, BLOB0:BLOB0 + B]                   # (N, C, B) sum_blob softmax
    bg_cnt = ge_s[:, 3, BG]                                # (N,)     #background pixels
    bcnt = ge_s[:, 3, BLOB0:BLOB0 + B]                     # (N, B)   #blob pixels
    nk = s_f - (bg_cnt[:, None] + bcnt)                    # (N, B)   #dropped pixels

    lse_bg = ge_s[:, 0, BG]                                # (N,)
    lse_bl = ge_s[:, 0, BLOB0:BLOB0 + B]                   # (N, B)
    x0_bg = ge_s[:, 1, BG]                                 # (N,)
    x1_bl = ge_s[:, 2, BLOB0:BLOB0 + B]                    # (N, B)

    # cross entropy on masked logits, mean over all S pixels
    ce = (lse_bg[:, None] + lse_bl - x1_bl - x0_bg[:, None]
          + nk * math.log(C)) / s_f                        # (N, B)

    # region proportions: dropped pixels predict uniform 1/C, gt target is {0,1}
    pk = bg_p[:, :, None] + blob_p                         # (N, C, B) sum_keep softmax
    pred_cnt = pk + nk[:, None, :] / C
    cidx = jnp.arange(C).reshape(1, C, 1)
    gt_cnt = jnp.where(cidx == 1, bcnt[:, None, :],
                       jnp.where(cidx == 0, s_f - bcnt[:, None, :], 0.0))
    pred_prop = (pred_cnt + EPS) / (s_f + EPS)
    gt_prop = (gt_cnt + EPS) / (s_f + EPS)
    reg = jnp.mean(jnp.abs(pred_prop - gt_prop), axis=1)   # (N, B)

    per_blob = RCE_WEIGHT * (ce + RCE_ALPHA * reg)         # (N, B)
    validb = (blob_labels > 0).astype(jnp.float32)
    cnt = jnp.sum(validb, axis=1)
    elem_loss = jnp.sum(per_blob * validb, axis=1) / jnp.maximum(cnt, 1.0)
    has_blob = (cnt > 0).astype(jnp.float32)
    blob_loss = jnp.sum(elem_loss * has_blob) / jnp.maximum(jnp.sum(has_blob), 1.0)

    return alpha * main_loss + beta * blob_loss


# -----------------------------------------------------------------------------
# Pure-JAX (unfused) reference of the same reconstructed semantics, for checking.
# -----------------------------------------------------------------------------
def _reference_loss(x, y, multi_label, blob_labels, alpha, beta):
    N, C, H, W = x.shape
    S = H * W
    xf = x.reshape(N, C, S).astype(jnp.float32)
    yf = y.reshape(N, S).astype(jnp.int32)
    mlf = multi_label.reshape(N, S).astype(jnp.int32)
    B = blob_labels.shape[1]
    lab = blob_labels.astype(jnp.int32)

    # main Tversky
    p = jax.nn.softmax(xf, axis=1)
    onehot = (yf[:, None, :] == jnp.arange(C)[None, :, None]).astype(jnp.float32)
    inter = (p * onehot).sum(-1)
    spred = p.sum(-1)
    sgt = onehot.sum(-1)
    tv = 1.0 - inter / (inter + FP * spred + FN * sgt + SMOOTH)
    main_loss = TVERSKY_WEIGHT * tv.mean()

    # blob RCE on masked logits
    blob_m = mlf[:, None, :] == lab[:, :, None]                       # (N, B, S)
    keep_m = blob_m | (mlf[:, None, :] == 0)
    xm = xf[:, None] * keep_m[:, :, None, :].astype(jnp.float32)      # (N, B, C, S)
    lse = jax.nn.logsumexp(xm, axis=2)                                # (N, B, S)
    tgt = blob_m.astype(jnp.int32)
    picked = jnp.take_along_axis(xm, tgt[:, :, None, :], axis=2)[:, :, 0, :]
    ce = (lse - picked).mean(-1)                                      # (N, B)
    pm = jax.nn.softmax(xm, axis=2)
    pred_cnt = pm.sum(-1)                                             # (N, B, C)
    b_cnt = tgt.sum(-1).astype(jnp.float32)                           # (N, B)
    zeros = jnp.zeros_like(b_cnt)
    gt_cnt = jnp.stack([S - b_cnt, b_cnt] + [zeros] * (C - 2), axis=-1)
    pred_prop = (pred_cnt + EPS) / (S + EPS)
    gt_prop = (gt_cnt + EPS) / (S + EPS)
    reg = jnp.abs(pred_prop - gt_prop).mean(-1)                       # (N, B)
    per_blob = RCE_WEIGHT * (ce + RCE_ALPHA * reg)

    validb = (lab > 0).astype(jnp.float32)
    cnt = validb.sum(1)
    elem = (per_blob * validb).sum(1) / jnp.maximum(cnt, 1.0)
    has = (cnt > 0).astype(jnp.float32)
    blob_loss = (elem * has).sum() / jnp.maximum(has.sum(), 1.0)
    return alpha * main_loss + beta * blob_loss


# -----------------------------------------------------------------------------
# Host-side connected components (mirrors cucim/skimage `label`, 8-connectivity).
# Data-dependent, no-grad label preprocessing -> done in numpy, not Pallas.
# -----------------------------------------------------------------------------
def connected_components_2d(mask):
    H, W = mask.shape
    labels = np.zeros((H, W), dtype=np.int32)
    cur = 0
    for i in range(H):
        for j in range(W):
            if mask[i, j] and labels[i, j] == 0:
                cur += 1
                stack = [(i, j)]
                labels[i, j] = cur
                while stack:
                    a, b = stack.pop()
                    for da in (-1, 0, 1):
                        for db in (-1, 0, 1):
                            na, nb = a + da, b + db
                            if (0 <= na < H and 0 <= nb < W
                                    and mask[na, nb] and labels[na, nb] == 0):
                                labels[na, nb] = cur
                                stack.append((na, nb))
    return labels


if __name__ == "__main__":
    N, C, H, W = 2, 4, 16, 16
    key = jax.random.PRNGKey(0)
    x = jax.random.normal(key, (N, C, H, W), dtype=jnp.float32)

    # deterministic binary ground truth with a few well-separated blobs
    y_np = np.zeros((N, 1, H, W), dtype=np.int32)
    y_np[0, 0, 2:5, 2:5] = 1
    y_np[0, 0, 9:13, 10:14] = 1
    y_np[1, 0, 0:3, 12:16] = 1
    y_np[1, 0, 7:9, 3:6] = 1
    y_np[1, 0, 12:15, 8:11] = 1

    # get_connected_components (cucim) equivalent, on host
    multi_np = np.zeros((N, H, W), dtype=np.int32)
    for i in range(N):
        multi_np[i] = connected_components_2d(y_np[i, 0] != 0)

    # pad per-element unique blob ids into a static (N, MAX_BLOBS) table
    blob_lab_np = np.zeros((N, MAX_BLOBS), dtype=np.int32)
    for i in range(N):
        u = np.unique(multi_np[i])
        u = u[u != 0][:MAX_BLOBS]   # blobs beyond MAX_BLOBS are dropped (static bound)
        blob_lab_np[i, : len(u)] = u

    y_j = jnp.asarray(y_np)
    ml_j = jnp.asarray(multi_np)[:, None]          # (N, 1, H, W) like multi_label.unsqueeze(1)
    bl_j = jnp.asarray(blob_lab_np)

    loss = btversky_rce_loss(x, y_j, ml_j, bl_j, alpha=2.0, beta=1.0)
    loss = jax.block_until_ready(loss)
    assert jnp.isfinite(loss)

    # pure-JAX reference check of the fused kernel + closed-form finalize
    ref = jax.block_until_ready(_reference_loss(x, y_j, ml_j, bl_j, 2.0, 1.0))
    np.testing.assert_allclose(np.asarray(loss), np.asarray(ref), rtol=1e-3, atol=1e-4)

    print("KERNEL_OK")
</pallas_src>

<mosaic_0001>
module attributes {stable_mosaic.version = 11 : i64} {
  func.func @_blob_stats_kernel(%arg0: i32, %arg1: i32, %arg2: i32, %arg3: memref<1x4x128xf32, #tpu.memory_space<vmem>>, %arg4: memref<1x1x128xi32, #tpu.memory_space<vmem>>, %arg5: memref<1x1x128xi32, #tpu.memory_space<vmem>>, %arg6: memref<1x8x1xi32, #tpu.memory_space<vmem>>, %arg7: memref<1x1x4x14xf32, #tpu.memory_space<vmem>>, %arg8: memref<1x1x4x14xf32, #tpu.memory_space<vmem>>) attributes {dimension_semantics = [#tpu.dimension_semantics<parallel>, #tpu.dimension_semantics<parallel>, #tpu.dimension_semantics<arbitrary>], iteration_bounds = array<i64: 2, 2, 1>, scalar_prefetch = 0 : i64, scratch_operands = 0 : i64, tpu.core_type = #tpu.core_type<tc>, window_params = [{transform_indices = @transform_0, window_bounds = array<i64: 1, 4, 128>}, {transform_indices = @transform_1, window_bounds = array<i64: 1, 1, 128>}, {transform_indices = @transform_2, window_bounds = array<i64: 1, 1, 128>}, {transform_indices = @transform_3, window_bounds = array<i64: 1, 8, 1>}, {transform_indices = @transform_4, window_bounds = array<i64: 1, 1, 4, 14>}, {transform_indices = @transform_5, window_bounds = array<i64: 1, 1, 4, 14>}]} {
    %c0_i32 = arith.constant 0 : i32
    %0 = arith.cmpi eq, %arg2, %c0_i32 : i32
    %1 = arith.extui %0 : i1 to i32
    %c0_i32_0 = arith.constant 0 : i32
    %2 = arith.cmpi ne, %1, %c0_i32_0 : i32
    scf.if %2 {
      %cst_33 = arith.constant 0.000000e+00 : f32
      %57 = vector.broadcast %cst_33 : f32 to vector<1x1x4x14xf32>
      %c0_34 = arith.constant 0 : index
      %c0_35 = arith.constant 0 : index
      %c0_36 = arith.constant 0 : index
      %c0_37 = arith.constant 0 : index
      %58 = vector.load %arg7[%c0_34, %c0_35, %c0_36, %c0_37] : memref<1x1x4x14xf32, #tpu.memory_space<vmem>>, vector<1x1x4x14xf32>
      tpu.vector_store %arg7[%c0_34, %c0_35, %c0_36, %c0_37], %57 {strides = array<i32>} : memref<1x1x4x14xf32, #tpu.memory_space<vmem>>, vector<1x1x4x14xf32>,
      %cst_38 = arith.constant 0.000000e+00 : f32
      %59 = vector.broadcast %cst_38 : f32 to vector<1x1x4x14xf32>
      %c0_39 = arith.constant 0 : index
      %c0_40 = arith.constant 0 : index
      %c0_41 = arith.constant 0 : index
      %c0_42 = arith.constant 0 : index
      %60 = vector.load %arg8[%c0_39, %c0_40, %c0_41, %c0_42] : memref<1x1x4x14xf32, #tpu.memory_space<vmem>>, vector<1x1x4x14xf32>
      tpu.vector_store %arg8[%c0_39, %c0_40, %c0_41, %c0_42], %59 {strides = array<i32>} : memref<1x1x4x14xf32, #tpu.memory_space<vmem>>, vector<1x1x4x14xf32>,
    } else {
    }
    %c0 = arith.constant 0 : index
    %c0_1 = arith.constant 0 : index
    %c0_2 = arith.constant 0 : index
    %3 = vector.load %arg3[%c0, %c0_1, %c0_2] : memref<1x4x128xf32, #tpu.memory_space<vmem>>, vector<1x4x128xf32>
    %4 = vector.shape_cast %3 : vector<1x4x128xf32> to vector<4x128xf32>
    %c0_3 = arith.constant 0 : index
    %c0_4 = arith.constant 0 : index
    %c0_5 = arith.constant 0 : index
    %5 = vector.load %arg4[%c0_3, %c0_4, %c0_5] : memref<1x1x128xi32, #tpu.memory_space<vmem>>, vector<1x1x128xi32>
    %6 = vector.shape_cast %5 : vector<1x1x128xi32> to vector<1x128xi32>
    %c0_6 = arith.constant 0 : index
    %c0_7 = arith.constant 0 : index
    %c0_8 = arith.constant 0 : index
    %7 = vector.load %arg5[%c0_6, %c0_7, %c0_8] : memref<1x1x128xi32, #tpu.memory_space<vmem>>, vector<1x1x128xi32>
    %8 = vector.shape_cast %7 : vector<1x1x128xi32> to vector<1x128xi32>
    %c0_9 = arith.constant 0 : index
    %c0_10 = arith.constant 0 : index
    %c0_11 = arith.constant 0 : index
    %9 = vector.load %arg6[%c0_9, %c0_10, %c0_11] : memref<1x8x1xi32, #tpu.memory_space<vmem>>, vector<1x8x1xi32>
    %10 = vector.shape_cast %9 : vector<1x8x1xi32> to vector<8x1xi32>
    %cst = arith.constant dense<0xFF800000> : vector<128xf32>
    %11 = vector.multi_reduction <maximumf>, %4, %cst [0] : vector<4x128xf32> to vector<128xf32>
    %12 = vector.shape_cast %11 : vector<128xf32> to vector<1x128xf32>
    %13 = vector.broadcast %12 : vector<1x128xf32> to vector<4x128xf32>
    %14 = arith.subf %4, %13 : vector<4x128xf32>
    %15 = math.exp %14 : vector<4x128xf32>
    %cst_12 = arith.constant dense<0.000000e+00> : vector<128xf32>
    %16 = vector.multi_reduction <add>, %15, %cst_12 [0] : vector<4x128xf32> to vector<128xf32>
    %17 = vector.shape_cast %16 : vector<128xf32> to vector<1x128xf32>
    %18 = tpu.reciprocal %17 : vector<1x128xf32> -> vector<1x128xf32>
    %19 = vector.broadcast %18 : vector<1x128xf32> to vector<4x128xf32>
    %20 = arith.mulf %15, %19 : vector<4x128xf32>
    %21 = math.log %17 : vector<1x128xf32>
    %22 = arith.addf %12, %21 : vector<1x128xf32>
    %23 = tpu.iota {dimensions = array<i32: 0>} : vector<4x1xi32>
    %24 = vector.broadcast %6 : vector<1x128xi32> to vector<4x128xi32>
    %25 = vector.broadcast %23 : vector<4x1xi32> to vector<4x128xi32>
    %26 = arith.cmpi eq, %24, %25 : vector<4x128xi32>
    %27 = arith.extui %26 : vector<4x128xi1> to vector<4x128xi32>
    %28 = arith.sitofp %27 : vector<4x128xi32> to vector<4x128xf32>
    %c0_i32_13 = arith.constant 0 : i32
    %29 = vector.broadcast %c0_i32_13 : i32 to vector<1x128xi32>
    %30 = arith.cmpi eq, %8, %29 : vector<1x128xi32>
    %31 = arith.extui %30 : vector<1x128xi1> to vector<1x128xi32>
    %32 = arith.sitofp %31 : vector<1x128xi32> to vector<1x128xf32>
    %33 = vector.broadcast %8 : vector<1x128xi32> to vector<8x128xi32>
    %34 = vector.broadcast %10 : vector<8x1xi32> to vector<8x128xi32>
    %35 = arith.cmpi eq, %33, %34 : vector<8x128xi32>
    %36 = arith.extui %35 : vector<8x128xi1> to vector<8x128xi32>
    %37 = arith.sitofp %36 : vector<8x128xi32> to vector<8x128xf32>
    %cst_14 = arith.constant 1.000000e+00 : f32
    %38 = vector.broadcast %cst_14 : f32 to vector<1x128xf32>
    %39 = tpu.concatenate %32, %37, %28, %38 in 0 : vector<1x128xf32>, vector<8x128xf32>, vector<4x128xf32>, vector<1x128xf32> -> vector<14x128xf32>
    %c0_15 = arith.constant 0 : index
    %c0_16 = arith.constant 0 : index
    %c0_17 = arith.constant 0 : index
    %c0_18 = arith.constant 0 : index
    %40 = vector.load %arg7[%c0_15, %c0_16, %c0_17, %c0_18] : memref<1x1x4x14xf32, #tpu.memory_space<vmem>>, vector<1x1x4x14xf32>
    %41 = vector.shape_cast %40 : vector<1x1x4x14xf32> to vector<4x14xf32>
    %cst_19 = arith.constant dense<0.000000e+00> : vector<4x14xf32>
    %42 = tpu.matmul %20, %39, %cst_19 {dimension_numbers = #tpu.dot_dimension_numbers<[1], [1], [0], [0], [0, 0, 1, 0], [], []>} : vector<4x128xf32>, vector<14x128xf32>, vector<4x14xf32> -> vector<4x14xf32>
    %43 = arith.addf %41, %42 : vector<4x14xf32>
    %c0_20 = arith.constant 0 : index
    %c0_21 = arith.constant 0 : index
    %c0_22 = arith.constant 0 : index
    %c0_23 = arith.constant 0 : index
    %44 = vector.load %arg7[%c0_20, %c0_21, %c0_22, %c0_23] : memref<1x1x4x14xf32, #tpu.memory_space<vmem>>, vector<1x1x4x14xf32>
    %45 = vector.shape_cast %44 : vector<1x1x4x14xf32> to vector<4x14xf32>
    %46 = vector.shape_cast %43 : vector<4x14xf32> to vector<1x1x4x14xf32>
    tpu.vector_store %arg7[%c0_20, %c0_21, %c0_22, %c0_23], %46 {strides = array<i32>} : memref<1x1x4x14xf32, #tpu.memory_space<vmem>>, vector<1x1x4x14xf32>,
    %47 = vector.extract_strided_slice %4 {offsets = [0, 0], sizes = [1, 128], strides = [1, 1]} : vector<4x128xf32> to vector<1x128xf32>
    %48 = vector.extract_strided_slice %4 {offsets = [1, 0], sizes = [1, 128], strides = [1, 1]} : vector<4x128xf32> to vector<1x128xf32>
    %49 = tpu.concatenate %22, %47, %48, %38 in 0 : vector<1x128xf32>, vector<1x128xf32>, vector<1x128xf32>, vector<1x128xf32> -> vector<4x128xf32>
    %c0_24 = arith.constant 0 : index
    %c0_25 = arith.constant 0 : index
    %c0_26 = arith.constant 0 : index
    %c0_27 = arith.constant 0 : index
    %50 = vector.load %arg8[%c0_24, %c0_25, %c0_26, %c0_27] : memref<1x1x4x14xf32, #tpu.memory_space<vmem>>, vector<1x1x4x14xf32>
    %51 = vector.shape_cast %50 : vector<1x1x4x14xf32> to vector<4x14xf32>
    %cst_28 = arith.constant dense<0.000000e+00> : vector<4x14xf32>
    %52 = tpu.matmul %49, %39, %cst_28 {dimension_numbers = #tpu.dot_dimension_numbers<[1], [1], [0], [0], [0, 0, 1, 0], [], []>} : vector<4x128xf32>, vector<14x128xf32>, vector<4x14xf32> -> vector<4x14xf32>
    %53 = arith.addf %51, %52 : vector<4x14xf32>
    %c0_29 = arith.constant 0 : index
    %c0_30 = arith.constant 0 : index
    %c0_31 = arith.constant 0 : index
    %c0_32 = arith.constant 0 : index
    %54 = vector.load %arg8[%c0_29, %c0_30, %c0_31, %c0_32] : memref<1x1x4x14xf32, #tpu.memory_space<vmem>>, vector<1x1x4x14xf32>
    %55 = vector.shape_cast %54 : vector<1x1x4x14xf32> to vector<4x14xf32>
    %56 = vector.shape_cast %53 : vector<4x14xf32> to vector<1x1x4x14xf32>
    tpu.vector_store %arg8[%c0_29, %c0_30, %c0_31, %c0_32], %56 {strides = array<i32>} : memref<1x1x4x14xf32, #tpu.memory_space<vmem>>, vector<1x1x4x14xf32>,
    return
  }
  func.func @transform_0(%arg0: i32, %arg1: i32, %arg2: i32) -> (i32, i32, i32) {
    %c1_i32 = arith.constant 1 : i32
    %0 = arith.muli %arg1, %c1_i32 : i32
    %1 = arith.addi %0, %arg2 : i32
    %c0_i32 = arith.constant 0 : i32
    %c0_i32_0 = arith.constant 0 : i32
    return %arg0, %c0_i32, %1 : i32, i32, i32
  }
  func.func @transform_1(%arg0: i32, %arg1: i32, %arg2: i32) -> (i32, i32, i32) {
    %c1_i32 = arith.constant 1 : i32
    %0 = arith.muli %arg1, %c1_i32 : i32
    %1 = arith.addi %0, %arg2 : i32
    %c0_i32 = arith.constant 0 : i32
    %c0_i32_0 = arith.constant 0 : i32
    return %arg0, %c0_i32, %1 : i32, i32, i32
  }
  func.func @transform_2(%arg0: i32, %arg1: i32, %arg2: i32) -> (i32, i32, i32) {
    %c1_i32 = arith.constant 1 : i32
    %0 = arith.muli %arg1, %c1_i32 : i32
    %1 = arith.addi %0, %arg2 : i32
    %c0_i32 = arith.constant 0 : i32
    %c0_i32_0 = arith.constant 0 : i32
    return %arg0, %c0_i32, %1 : i32, i32, i32
  }
  func.func @transform_3(%arg0: i32, %arg1: i32, %arg2: i32) -> (i32, i32, i32) {
    %c0_i32 = arith.constant 0 : i32
    %c0_i32_0 = arith.constant 0 : i32
    %c0_i32_1 = arith.constant 0 : i32
    return %arg0, %c0_i32, %c0_i32_0 : i32, i32, i32
  }
  func.func @transform_4(%arg0: i32, %arg1: i32, %arg2: i32) -> (i32, i32, i32, i32) {
    %c0_i32 = arith.constant 0 : i32
    %c0_i32_0 = arith.constant 0 : i32
    %c0_i32_1 = arith.constant 0 : i32
    return %arg0, %arg1, %c0_i32, %c0_i32_0 : i32, i32, i32, i32
  }
  func.func @transform_5(%arg0: i32, %arg1: i32, %arg2: i32) -> (i32, i32, i32, i32) {
    %c0_i32 = arith.constant 0 : i32
    %c0_i32_0 = arith.constant 0 : i32
    %c0_i32_1 = arith.constant 0 : i32
    return %arg0, %arg1, %c0_i32, %c0_i32_0 : i32, i32, i32, i32
  }
}

</mosaic_0001>

<bundles_post_ra>
// kernel: tpu_custom_call.1
= control target key start
LH: loop header
LB: loop body
LE: loop exit
PB: predicated region body
PF: predicated region fallthrough
CT: control target
= control target key end

     0   :  { %11 = vsyncpa [#allocation3], 0  ;;  %s1283_s0 = inlined_call_operand.vmem [shape: f32[2,4,256], index: 0, kind: input, shape index: {}]   ;;  %s1284_s1 = inlined_call_operand.vmem [shape: s32[2,1,256], index: 1, kind: input, shape index: {}]   ;;  %s1285_s2 = inlined_call_operand.vmem [shape: s32[2,1,256], index: 2, kind: input, shape index: {}]   ;;  %s1286_s3 = inlined_call_operand.vmem [shape: s32[2,8,1], index: 3, kind: input, shape index: {}]   ;;  %s1287_s4 = inlined_call_operand.hbm [shape: f32[2,2,4,14], index: 4, kind: output, shape index: {0}]   ;;  %s1288_s5 = inlined_call_operand.hbm [shape: f32[2,2,4,14], index: 5, kind: output, shape index: {1}]  }
   0x1   :  { %13 = vsyncpa [#allocation3 + $0x1], 0 }
   0x2   :  { %14 = vsyncpa [#allocation5], 0 }
   0x3   :  { %16 = vsyncpa [#allocation5 + $0x1], 0  ;;  %s1078_s18 = smov 0   ;;  %s1080_s19 = smov 0  }
   0x4   :  { %s1082_s20 = smov 0   ;;  %s1084_s21 = smov 0  }
   0x5   :  { %s1086_s22 = smov 0   ;;  %s1088_s23 = smov 0  }
   0x6   :  { %s1090_s24 = smov 0   ;;  %s1092_s25 = smov 0  }
   0x7 LB: > { %s777_s26 = sadd.s32 4294967295, %s1040_s25   ;;  %s778_s27 = sadd.s32 4294967294, %s1040_s25   ;;  %s1040_s25 = sphi %s1092_s25, %s22_s25   ;;  %s1036_s24 = sphi %s1090_s24, %s1297_s24   ;;  %s1032_s23 = sphi %s1088_s23, %s1296_s23   ;;  %s1028_s22 = sphi %s1086_s22, %s1295_s22   ;;  %s1024_s21 = sphi %s1084_s21, %s1294_s21   ;;  %s1020_s20 = sphi %s1082_s20, %s1293_s20   ;;  %s1016_s19 = sphi %s1080_s19, %s1292_s19   ;;  %s1012_s18 = sphi %s1078_s18, %s1291_s18  }
   0x8   : > { %s37_s28 = sadd.s32 1, %s1032_s23  ;;  %s41_s29 = sadd.s32 1, %s1036_s24 }
   0x9   : > { %p39_p0 = scmp.ge.s32.totalorder %s37_s28, 2  ;;  %p176_p1 = scmp.ne.s32.totalorder %s1020_s20, %s1016_s19 }
   0xa   : > { %p177_p2 = scmp.eq.s32.totalorder %s777_s26, 3  ;;  %p182_p5 = scmp.ne.s32.totalorder %s1016_s19, %s1012_s18 }
   0xb   : > { %s1299_s28 = smov (%p39_p0, %s37_s28), 0  ;;  %s1301_s29 = smov (!%p39_p0, %s41_s29), %s1036_s24 }
   0xc   : > { %s162_s30 = ssub.s32 %s1032_s23, %s1299_s28  ;;  %p1129_p3 = por %p177_p2, %p176_p1 }
   0xd   : > { %p43_p4 = scmp.ge.s32.totalorder %s1301_s29, 2  ;;  %p183_p6 = scmp.eq.s32.totalorder %s778_s27, 3 }
   0xe   : > { %p781_p7 = scmp.ge.s32.totalorder %s1040_s25, 1  ;;  %p273_p9 = scmp.lt.s32.totalorder %s1040_s25, 5 }
   0xf   : > { %s1303_s29 = smov (%p43_p4, %s1301_s29), 0  ;;  %p1138_p8 = por %p183_p6, %p182_p5 }
  0x10   : > { %s161_s8 = ssub.s32 %s1036_s24, %s1303_s29  ;;  %s166_s9 = sadd.s32 1, %s1020_s20 }
  0x11   : > { %s163_s10 = sor.u32 %s162_s30, %s161_s8  ;;  %p274_p10 = pnand %p781_p7, %p273_p9 }
  0x12   : > { %p164_p11 = scmp.eq.s32.totalorder %s163_s10, 0  ;;  %p331_p12 = scmp.lt.s32.totalorder (!%p274_p10), %s1028_s22, 1  ;;  %v1042_v0 = vmov (!%p274_p10), 0   ;;  %v1043_v2 = vmov (!%p274_p10), 0.0|0.0   ;;  %vm1044_vm0 = vmmov (!%p274_p10), 0   ;;  %v1045_v3 = vmov (!%p274_p10), 0.0  }
  0x13   : > { %277 = sbr.rel (%p274_p10) target bundleno = 425 (0x1a9), region = 36  ;;  %907 = vset.pattern.permute.xlu0 (!%p274_p10), %v1042_v0  ;;  %821 = vmatprep.subr.bf16.mxu0 (!%p274_p10), %v1043_v2  ;;  %s1157_s17 = sand.u32 (!%p274_p10), 1, %s1016_s19   ;;  %vm366_vm1 = vcmask (!%p274_p10), 109568   ;;  %vm373_vm2 = vcmask (!%p274_p10), 1043456   ;;  %v396_v22 = vlaneseq (!%p274_p10)  ;;  %vm424_vm6 = vcmask (!%p274_p10), 1040384  }
  0x14   : > { %s1147_s11 = scalar_select %p164_p11, %s1020_s20, %s166_s9  }
  0x15   : > { %824 = vmatprep.subr.bf16.mxu1 (!%p274_p10), %v1043_v2  ;;  %811 = vmatprep.mubr.msk.f32.mxu0 (!%p274_p10), %vm1044_vm0, %v1045_v3  ;;  %s782_s26 = sshll.u32 (!%p274_p10), %s1157_s17, 2  ;;  %p333_p13 = scmp.lt.s32.totalorder (!%p274_p10), %s1024_s21, 1  ;;  %v397_v23 = vshrl.u32 (!%p274_p10), %v396_v22, 7  ;;  %vm427_vm7 = vcmask (!%p274_p10), 1044480   ;;  %vm507_vm8 = vcmask (!%p274_p10), 1041408   ;;  %vm509_vm9 = vcmask (!%p274_p10), 1042432  }
  0x16   : > { %818 = vmatprep.mubr.msk.f32.mxu1 (!%p274_p10), %vm1044_vm0, %v1045_v3  ;;  %s1163_s27 = scalar_lea.vmem (!%p274_p10), [#allocation2], %s782_s26  ;;  %s795_s14 = sshll.u32 (!%p274_p10), %s1028_s22, 1 }
  0x17   : > { %367 = vst.msk [vmem:[%s1163_s27] sm:$0xf] (!%p274_p10), %vm366_vm1, %v1045_v3  ;;  %v410_v25 = vsub.s32 (!%p274_p10), 0, %v397_v23 }
  0x1a   : > { %s332_s12 = scalar_select %p331_p12, %s1028_s22, 1 }
  0x1b   : > { %s334_s30 = scalar_select %p333_p13, %s1024_s21, 1 }
  0x1c   : > { %s788_s13 = sshll.u32 %s332_s12, 3  ;;  %s784_s8 = sshll.u32 %s332_s12, 1 }
  0x1d   : > { %s361_s16 = scalar_lea.vmem %s1286_s3, %s788_s13  ;;  %s1169_s9 = sadd.s32 %s784_s8, %s334_s30 }
  0x1e   : > { %v372_v1 = vld [vmem:[%s361_s16] sm:$0xff]  ;;  %s785_s10 = sshll.u32 %s1169_s9, 2  ;;  %s347_s30 = scalar_lea.vmem %s1284_s1, %s1169_s9 }
  0x1f   : > { %413 = vperm.xlu0 %907, %v372_v1   ;;  %s338_s15 = scalar_lea.vmem %s1283_s0, %s785_s10  ;;  %s356_s13 = scalar_lea.vmem %s1285_s2, %s1169_s9  ;;  %v789_v24 = vld [vmem:[%s347_s30] ss:$0 sm:$0xff] }
  0x20   : > { %v369_v4 = vld [vmem:[%s338_s15] sm:$0xf]  ;;  %vm402_vm3 = vcmp.eq.s32.totalorder %v789_v24, %v397_v23  ;;  %s329_s9 = scalar_lea.vmem [#allocation4], %s782_s26  ;;  %s601_s15 = sadd.s32 %s1024_s21, %s795_s14 }
  0x21   : > { %v374_v5 = vsel %vm373_vm2, %v369_v4, -inf  ;;  %v371_v26 = vld [vmem:[%s356_s13] sm:$0x1]  ;;  %v790_v29 = vsel %vm402_vm3, 1.0, %v1045_v3  ;;  %v504_v37 = vrot.slane %v369_v4, 7  ;;  %s796_s12 = sshll.u32 %s601_s15, 6 }
  0x22   : > { %v375_v6 = vrot.slane %v374_v5, 4  ;;  %v411_v28 = vrot.slane %v371_v26, %v410_v25  ;;  %vm405_vm4 = vcmp.eq.s32.totalorder %v371_v26, 0  ;;  %v422_v32 = vrot.slane %v790_v29, 7  ;;  %368 = vst.msk [vmem:[%s329_s9] sm:$0xf] %vm366_vm1, %v1045_v3  ;;  %s605_s16 = sshll.u32 %s1163_s27, 4  ;;  %s1197_s13 = scalar_lea.hbm %s1287_s4, %s796_s12  ;;  %s1199_s16 = int_to_ptr.vmem [resolvable:$true] %s605_s16 }
  0x23   : > { %v791_v34 = vsel %vm405_vm4, 1.0, %v1045_v3  ;;  %v429_v47 = vld [vmem:[%s1163_s27] sm:$0xf]  ;;  %s620_s30 = sshll.u32 %s329_s9, 4  ;;  %s1204_s26 = scalar_lea.hbm %s1288_s5, %s796_s12  ;;  %s1206_s30 = int_to_ptr.vmem [resolvable:$true] %s620_s30 }
  0x24   : > { %v376_v7 = vmax.f32 %v374_v5, %v375_v6  ;;  %s585_s14 = scalar_lea.sflag [#allocation3], %s1157_s17  ;;  %s914_s15 = scalar_lea.vmem %s1199_s16, 64 }
  0x25   : > { %p915_p0 = scmp.ne.s32.totalorder %s1199_s16, %s914_s15  ;;  %s1046_s8 = smov [#allocation2]  }
  0x26   : > { %v377_v8 = vrot.slane %v376_v7, 2  ;;  %s918_s10 = sshll.u32 %s1046_s8, 4  ;;  %s919_s10 = int_to_ptr.vmem [resolvable:$false] %s918_s10 }
  0x27   : > { %p916_p1 = pnand %p915_p0, %p1129_p3  ;;  %s920_s21 = scalar_lea.vmem %s919_s10, 128 }
  0x28   : > { %v378_v9 = vmax.f32 %v376_v7, %v377_v8  ;;  %p921_p4 = scmp.lt.s32.totalorder %s1199_s16, %s919_s10  ;;  %p922_p5 = scmp.lt.s32.totalorder %s920_s21, %s914_s15 }
  0x29   : > { %v511_v48 = vld [vmem:[%s329_s9] sm:$0xf]  ;;  %p917_p2 = pneg %p916_p1 }
  0x2a   : > { %v379_v10 = vrot.slane %v378_v9, 1  ;;  %p923_p6 = por %p922_p5, %p921_p4 }
  0x2c   : > { %v380_v11 = vmax.f32 %v378_v9, %v379_v10  ;;  %p924_p7 = pnand %p923_p6, %p917_p2 }
  0x2e   : > { %v381_v12 = vsub.f32 %v369_v4, %v380_v11 }
  0x30   : > { %v382_v13 = vmul.f32 1.442695, %v381_v12 }
  0x32   : > { %908 = vpow2.f32 %v382_v13 }
  0x3c   : > { %v909_v14 = vpop.eup %908 }
  0x3d   : > { %v384_v15 = vsel %vm373_vm2, %v909_v14, 0.0 }
  0x3e   : > { %v385_v16 = vrot.slane %v384_v15, 4 }
  0x40   : > { %v386_v17 = vadd.f32 %v385_v16, %v384_v15 }
  0x42   : > { %v387_v18 = vrot.slane %v386_v17, 2 }
  0x44   : > { %v388_v19 = vadd.f32 %v387_v18, %v386_v17 }
  0x46   : > { %v389_v20 = vrot.slane %v388_v19, 1 }
  0x48   : > { %v390_v21 = vadd.f32 %v389_v20, %v388_v19 }
  0x4a   : > { %910 = vlog2.f32 %v390_v21 }
  0x4b   : > { %912 = vrcp.f32 %v390_v21 }
  0x54   : > { %v911_v27 = vpop.eup %910 }
  0x55   : > { %v394_v30 = vmul.f32 0.6931472, %v911_v27  ;;  %v913_v43 = vpop.eup %912 }
  0x56   : > { %v392_v45 = vmul.f32 %v913_v43, %v909_v14 }
  0x57   : > { %v395_v36 = vadd.f32 %v394_v30, %v380_v11 }
  0x59   : > { %v506_v42 = vsel %vm424_vm6, %v395_v36, %v504_v37 }
  0x5a   : > { %v508_v44 = vsel %vm507_vm8, %v506_v42, %v504_v37 }
  0x5b   : > { %v510_v46 = vsel %vm509_vm9, %v508_v44, 1.0 }
  0x9e   : > { %v414_v31 = vpop.permute.xlu0 %413 }
  0x9f   : > { %vm415_vm5 = vcmp.eq.s32.totalorder %v411_v28, %v414_v31 }
  0xa0   : > { %v792_v33 = vsel %vm415_vm5, 1.0, %v1045_v3 }
  0xa1   : > { %v419_v35 = vrot.slane %v792_v33, 7 }
  0xa3   : > { %v425_v38 = vsel %vm424_vm6, %v791_v34, %v419_v35  ;;  %v426_v39 = vsel %vm424_vm6, %v419_v35, %v422_v32 }
  0xa4   : > { %v428_v40 = vsel %vm427_vm7, %v426_v39, 1.0 }
  0xa5   : > { %v822_v41 = vpack.c.bf16 %v428_v40, %v425_v38 }
  0xa7   : > { %823 = vmatpush3.bf16.xpose.msra.mxu0 %v822_v41  ;;  %826 = vmatpush3.bf16.xpose.msra.mxu1 %v822_v41 }
  0xae   : > { %812 = vmatmul.mubr.f32.vlgmr.msra.gmra.mrb[0].mxu0 %v392_v45  ;;  %819 = vmatmul.mubr.f32.vlgmr.msra.gmra.mrb[0].mxu1 %v510_v46 }
 0x181   : > { %v496_v49 = vpop.f32.mrb[0].mxu0  ;;  %v578_v50 = vpop.f32.mrb[0].mxu1 }
 0x182   : > { %v500_v51 = vadd.f32 %v496_v49, %v429_v47  ;;  %v582_v52 = vadd.f32 %v578_v50, %v511_v48  ;;  %v813_v53 = vpop.f32.mrb[1].mxu0  ;;  %v820_v54 = vpop.f32.mrb[1].mxu1 }
 0x184   : > { %502 = vst.msk [vmem:[%s1163_s27] sm:$0xf] %vm366_vm1, %v500_v51  ;;  %583 = vst.msk [vmem:[%s329_s9] sm:$0xf] %vm366_vm1, %v582_v52 }
 0x185   : > { %927 = shalt.err (!%p924_p7)
}
 0x186   : > { %s928_s27 = scalar_lea.hbm %s1197_s13, 64  ;;  %s932_s22 = scalar_lea.hbm %s1287_s4, 256 }
 0x187   : > { %p929_p9 = scmp.ne.s32.totalorder %s1197_s13, %s928_s27  ;;  %p933_p12 = scmp.lt.u32.totalorder %s1197_s13, %s1287_s4 }
 0x188   : > { %p934_p13 = scmp.lt.u32.totalorder %s932_s22, %s928_s27  ;;  %p936_p1 = scmp.lt.u32.totalorder %s928_s27, %s1197_s13 }
 0x189   : > { %p930_p10 = pnand %p929_p9, %p1129_p3 }
 0x18a   : > { %p935_p0 = por %p934_p13, %p933_p12 }
 0x18b   : > { %p931_p11 = pneg %p930_p10 }
 0x18c   : > { %p937_p2 = por %p936_p1, %p935_p0 }
 0x18e   : > { %p938_p4 = pnand %p937_p2, %p931_p11 }
 0x190   : > { %941 = shalt.err (!%p938_p4)
}
 0x191   : > { %827 = dma.vmem_to_hbm [thread:$0]  (%p1129_p3), %s1199_s16, 64, %s1197_s13, %s585_s14  }
 0x192   : > { %s590_s15 = scalar_lea.sflag [#allocation5], %s1157_s17  ;;  %s942_s21 = scalar_lea.vmem %s1206_s30, 64 }
 0x193   : > { %p943_p5 = scmp.ne.s32.totalorder %s1206_s30, %s942_s21  ;;  %s1047_s27 = smov [#allocation4]  }
 0x194   : > { %s946_s9 = sshll.u32 %s1047_s27, 4  ;;  %s947_s9 = int_to_ptr.vmem [resolvable:$false] %s946_s9 }
 0x195   : > { %p944_p6 = pnand %p943_p5, %p1129_p3  ;;  %s948_s12 = scalar_lea.vmem %s947_s9, 128 }
 0x196   : > { %p949_p9 = scmp.lt.s32.totalorder %s1206_s30, %s947_s9  ;;  %p950_p10 = scmp.lt.s32.totalorder %s948_s12, %s942_s21 }
 0x197   : > { %p945_p7 = pneg %p944_p6 }
 0x198   : > { %p951_p11 = por %p950_p10, %p949_p9 }
 0x19a   : > { %p952_p12 = pnand %p951_p11, %p945_p7 }
 0x19c   : > { %955 = shalt.err (!%p952_p12)
}
 0x19d   : > { %s956_s17 = scalar_lea.hbm %s1204_s26, 64  ;;  %s960_s14 = scalar_lea.hbm %s1288_s5, 256 }
 0x19e   : > { %p957_p13 = scmp.ne.s32.totalorder %s1204_s26, %s956_s17  ;;  %p961_p2 = scmp.lt.u32.totalorder %s1204_s26, %s1288_s5 }
 0x19f   : > { %p962_p4 = scmp.lt.u32.totalorder %s960_s14, %s956_s17  ;;  %p964_p6 = scmp.lt.u32.totalorder %s956_s17, %s1204_s26 }
 0x1a0   : > { %p958_p0 = pnand %p957_p13, %p1129_p3 }
 0x1a1   : > { %p963_p5 = por %p962_p4, %p961_p2 }
 0x1a2   : > { %p959_p1 = pneg %p958_p0 }
 0x1a3   : > { %p965_p7 = por %p964_p6, %p963_p5 }
 0x1a5   : > { %p966_p9 = pnand %p965_p7, %p959_p1 }
 0x1a7   : > { %969 = shalt.err (!%p966_p9)
}
 0x1a8   : > { %828 = dma.vmem_to_hbm [thread:$0]  (%p1129_p3), %s1206_s30, 64, %s1204_s26, %s590_s15  }
 0x1a9 PF: > { %p838_p10 = scmp.ge.s32.totalorder %s1040_s25, 2  ;;  %s632_s10 = sand.u32 1, %s1012_s18  }
 0x1aa   : > { %s633_s21 = scalar_lea.sflag [#allocation3], %s632_s10 }
 0x1ab   : > { %p832_p11 = pnand %p838_p10, %p1138_p8 }
 0x1ad   : > { %1003 = dma.done.wait (!%p832_p11), %s633_s21, 64  }
 0x1ae   : > { %1005 = vsyncadd (!%p832_p11), %s633_s21, 4294967232  ;;  %s642_s27 = scalar_lea.sflag [#allocation5], %s632_s10 }
 0x1af   : > { %1007 = dma.done.wait (!%p832_p11), %s642_s27, 64  }
 0x1b0   : > { %1009 = vsyncadd (!%p832_p11), %s642_s27, 4294967232  ;;  %s22_s25 = sadd.s32 1, %s1040_s25   ;;  %s1291_s18 = smov %s1016_s19 }
 0x1b1   : > { %p19_p12 = scmp.ge.s32.totalorder %s22_s25, 6   ;;  %s1292_s19 = smov %s1020_s20 }
 0x1b2   : > { %s1293_s20 = smov %s1147_s11  ;;  %s1294_s21 = smov %s1032_s23 }
 0x1b3   : > { %s1295_s22 = smov %s1036_s24  ;;  %s1296_s23 = smov %s1299_s28 }
 0x1b4   : > { %s1297_s24 = smov %s1303_s29  ;;  %21 = sbr.rel (!%p19_p12) target bundleno = 7 (0x7), region = 101 }
 0x1bb   :  { %647 = vsyncpa [#allocation3], 1 }
 0x1bc   :  { %649 = vsyncpa [#allocation3 + $0x1], 1 }
 0x1bd   :  { %650 = vsyncpa [#allocation5], 1 }
 0x1be   :  { %652 = vsyncpa [#allocation5 + $0x1], 1 }

</bundles_post_ra>
